<compile_context>
chip_gen: v7x
topology: tpu7x:2x2x1
jax: 0.10.0
libtpu: 0.0.40
codegen_flags: <defaults>
</compile_context>

<pallas_src>
import jax
import jax.numpy as jnp
import numpy as np
from jax import lax
from jax.experimental import pallas as pl
from jax.experimental.pallas import tpu as pltpu


def _row_selectors(H, tile_rows, n_tiles):
    """0/1 matrices folding the 2x nearest upsample + zero pad + kh row shift.

    R[t, kh*Tp + i, r] = 1  iff output row p = t*Tp + i reads upsampled row
    p + kh - 1 (i.e. input row (p+kh-1)//2), zero outside the padded range.
    """
    H2 = 2 * H
    R = np.zeros((n_tiles, 3 * tile_rows, H), np.float32)
    for t in range(n_tiles):
        for kh in range(3):
            for i in range(tile_rows):
                r = t * tile_rows + i + kh - 1
                if 0 <= r < H2:
                    R[t, kh * tile_rows + i, r // 2] = 1.0
    return R


def _col_selectors(W):
    """A[kw, s, q] = 1 iff output col q reads upsampled col q+kw-1 == 2s or 2s+1."""
    W2 = 2 * W
    A = np.zeros((3, W, W2), np.float32)
    for kw in range(3):
        for q in range(W2):
            s = q + kw - 1
            if 0 <= s < W2:
                A[kw, s // 2, q] = 1.0
    return A


def _pick_row_tile(H2, lane_width):
    """Largest row tile (multiple of 8, divides H2) whose out block is <= 2 MiB."""
    target = max(8, (2 * 1024 * 1024) // (4 * lane_width))
    if H2 <= target:
        return H2
    t = (min(target, H2) // 8) * 8
    while t >= 8:
        if H2 % t == 0:
            return t
        t -= 8
    return H2


def _upconv_kernel(x_ref, r_ref, m_ref, b_ref, o_ref):
    # x_ref: (1, H, Cin*W)         one image, channels packed along lanes
    # r_ref: (1, 3*Tp, H)          0/1 row selectors (upsample + pad + kh shift)
    # m_ref: (3, Cin*W, Cout*2W)   weight-folded column-tap / channel-mix / Cout-pack
    # b_ref: (1, Cout*2W)          lane-replicated bias
    # o_ref: (1, Tp, Cout*2W)
    tp = o_ref.shape[1]
    x = x_ref[0]                                                    # loaded once
    # All three row taps for every input channel in one matmul (K = H).
    rows = jnp.dot(r_ref[0], x, preferred_element_type=jnp.float32)  # (3*Tp, Cin*W)
    # Column taps + channel mix + Cout lane-packing: one matmul per kh (K = Cin*W).
    acc = jnp.dot(rows[0 * tp:1 * tp], m_ref[0], preferred_element_type=jnp.float32)
    acc = acc + jnp.dot(rows[1 * tp:2 * tp], m_ref[1],
                        preferred_element_type=jnp.float32)
    acc = acc + jnp.dot(rows[2 * tp:3 * tp], m_ref[2],
                        preferred_element_type=jnp.float32)
    o_ref[0] = jnp.maximum(acc + b_ref[...], 0.0).astype(o_ref.dtype)   # full-lane vst


def upconv_block(x, w, b):
    """x: (N, Cin, H, W) f32 (NCHW); w: (3, 3, Cin, Cout) HWIO; b: (Cout,).

    Returns ReLU(conv3x3_pad1(upsample_nearest_2x(x)) + b) as (N, Cout, 2H, 2W).
    """
    N, cin, H, W = x.shape
    assert w.shape[:3] == (3, 3, cin)
    cout = w.shape[-1]
    H2, W2 = 2 * H, 2 * W
    lane_w = cout * W2

    tp = _pick_row_tile(H2, lane_w)
    n_tiles = H2 // tp

    # Tiny constants.  M[kh, ci*W + s, co*W2 + q] = sum_kw w[kh,kw,ci,co] * A[kw,s,q]
    # folds the column selectors, the Cin->Cout mix and the Cout lane packing.
    r_sel = jnp.asarray(_row_selectors(H, tp, n_tiles))            # (T, 3*Tp, H)
    a_sel = jnp.asarray(_col_selectors(W))                         # (3, W, W2)
    m_fold = jnp.einsum('hkio,ksq->hisoq', jnp.asarray(w, jnp.float32), a_sel,
                        precision=lax.Precision.HIGHEST)
    m_fold = m_fold.reshape(3, cin * W, lane_w)                    # (3, Cin*W, Cout*W2)
    b_row = jnp.repeat(jnp.asarray(b, jnp.float32), W2).reshape(1, lane_w)

    # Lane-pack input channels: (N, Cin, H, W) -> (N, H, Cin*W).  An 8 KiB wrapper
    # transpose that makes the row matmul RHS Cin*W lanes wide (no per-ci loop).
    x2 = jnp.asarray(x, jnp.float32).transpose(0, 2, 1, 3).reshape(N, H, cin * W)

    # TODO(synk): for very large W also tile columns and generate the selector /
    # weight-fold constants in-kernel (iota + compare) so M stays O(tile^2), and
    # switch the batch axis to pltpu.CORE_PARALLEL to occupy both v7x TensorCores.
    out = pl.pallas_call(
        _upconv_kernel,
        out_shape=jax.ShapeDtypeStruct((N, H2, lane_w), jnp.float32),
        grid=(N, n_tiles),
        in_specs=[
            pl.BlockSpec((1, H, cin * W), lambda n, t: (n, 0, 0)),     # x: 1 DMA/img
            pl.BlockSpec((1, 3 * tp, H), lambda n, t: (t, 0, 0)),      # row selectors
            pl.BlockSpec((3, cin * W, lane_w), lambda n, t: (0, 0, 0)),  # M (const)
            pl.BlockSpec((1, lane_w), lambda n, t: (0, 0)),            # bias row
        ],
        out_specs=pl.BlockSpec((1, tp, lane_w), lambda n, t: (n, t, 0)),
        compiler_params=pltpu.CompilerParams(
            dimension_semantics=("parallel", "arbitrary")),
    )(x2, r_sel, m_fold, b_row)

    # (N, H2, Cout*W2) -> NCHW: free reshape + a tiny transpose of the output slab.
    return out.reshape(N, H2, cout, W2).transpose(0, 2, 1, 3)


def _reference_forward(x, w, b):
    """Plain-JAX reference: Upsample(nearest, 2x) -> conv3x3(pad=1)+bias -> ReLU."""
    up = jnp.repeat(jnp.repeat(x, 2, axis=2), 2, axis=3)
    dn = lax.conv_dimension_numbers(up.shape, w.shape, ('NCHW', 'HWIO', 'NCHW'))
    y = lax.conv_general_dilated(up, w, (1, 1), ((1, 1), (1, 1)),
                                 dimension_numbers=dn)
    y = y + b.reshape(1, -1, 1, 1)
    return jnp.maximum(y, 0.0)


if __name__ == "__main__":
    key = jax.random.PRNGKey(0)
    k = jax.random.split(key, 3)

    N, Cin, Cout, H, W = 2, 4, 4, 16, 16
    x = jax.random.normal(k[0], (N, Cin, H, W), jnp.float32)
    w = 0.1 * jax.random.normal(k[1], (3, 3, Cin, Cout), jnp.float32)   # HWIO
    b = 0.1 * jax.random.normal(k[2], (Cout,), jnp.float32)

    out = upconv_block(x, w, b)
    out = jax.block_until_ready(out)

    ref = _reference_forward(x, w, b)
    np.testing.assert_allclose(np.asarray(out), np.asarray(ref),
                               atol=1e-3, rtol=1e-3)
    print("KERNEL_OK")
</pallas_src>

<mosaic_0001>
module attributes {stable_mosaic.version = 11 : i64} {
  func.func @_upconv_kernel(%arg0: i32, %arg1: i32, %arg2: memref<1x16x64xf32, #tpu.memory_space<vmem>>, %arg3: memref<1x96x16xf32, #tpu.memory_space<vmem>>, %arg4: memref<3x64x128xf32, #tpu.memory_space<vmem>>, %arg5: memref<1x128xf32, #tpu.memory_space<vmem>>, %arg6: memref<1x32x128xf32, #tpu.memory_space<vmem>>) attributes {dimension_semantics = [#tpu.dimension_semantics<parallel>, #tpu.dimension_semantics<arbitrary>], iteration_bounds = array<i64: 2, 1>, scalar_prefetch = 0 : i64, scratch_operands = 0 : i64, tpu.core_type = #tpu.core_type<tc>, window_params = [{transform_indices = @transform_0, window_bounds = array<i64: 1, 16, 64>}, {transform_indices = @transform_1, window_bounds = array<i64: 1, 96, 16>}, {pipeline_mode = #tpu.pipeline_mode<synchronous>, transform_indices = @transform_2, window_bounds = array<i64: 3, 64, 128>}, {pipeline_mode = #tpu.pipeline_mode<synchronous>, transform_indices = @transform_3, window_bounds = array<i64: 1, 128>}, {transform_indices = @transform_4, window_bounds = array<i64: 1, 32, 128>}]} {
    %c0 = arith.constant 0 : index
    %c0_0 = arith.constant 0 : index
    %c0_1 = arith.constant 0 : index
    %0 = vector.load %arg2[%c0, %c0_0, %c0_1] : memref<1x16x64xf32, #tpu.memory_space<vmem>>, vector<1x16x64xf32>
    %1 = vector.shape_cast %0 : vector<1x16x64xf32> to vector<16x64xf32>
    %c0_2 = arith.constant 0 : index
    %c0_3 = arith.constant 0 : index
    %c0_4 = arith.constant 0 : index
    %2 = vector.load %arg3[%c0_2, %c0_3, %c0_4] : memref<1x96x16xf32, #tpu.memory_space<vmem>>, vector<1x96x16xf32>
    %3 = vector.shape_cast %2 : vector<1x96x16xf32> to vector<96x16xf32>
    %cst = arith.constant dense<0.000000e+00> : vector<96x64xf32>
    %4 = tpu.matmul %3, %1, %cst {dimension_numbers = #tpu.dot_dimension_numbers<[1], [0], [0], [1], [0, 0, 1, 1], [], []>} : vector<96x16xf32>, vector<16x64xf32>, vector<96x64xf32> -> vector<96x64xf32>
    %5 = vector.extract_strided_slice %4 {offsets = [0, 0], sizes = [32, 64], strides = [1, 1]} : vector<96x64xf32> to vector<32x64xf32>
    %c0_5 = arith.constant 0 : index
    %c0_6 = arith.constant 0 : index
    %c0_7 = arith.constant 0 : index
    %6 = vector.load %arg4[%c0_5, %c0_6, %c0_7] : memref<3x64x128xf32, #tpu.memory_space<vmem>>, vector<1x64x128xf32>
    %7 = vector.shape_cast %6 : vector<1x64x128xf32> to vector<64x128xf32>
    %cst_8 = arith.constant dense<0.000000e+00> : vector<32x128xf32>
    %8 = tpu.matmul %5, %7, %cst_8 {dimension_numbers = #tpu.dot_dimension_numbers<[1], [0], [0], [1], [0, 0, 1, 1], [], []>} : vector<32x64xf32>, vector<64x128xf32>, vector<32x128xf32> -> vector<32x128xf32>
    %9 = vector.extract_strided_slice %4 {offsets = [32, 0], sizes = [32, 64], strides = [1, 1]} : vector<96x64xf32> to vector<32x64xf32>
    %c1 = arith.constant 1 : index
    %c0_9 = arith.constant 0 : index
    %c0_10 = arith.constant 0 : index
    %10 = vector.load %arg4[%c1, %c0_9, %c0_10] : memref<3x64x128xf32, #tpu.memory_space<vmem>>, vector<1x64x128xf32>
    %11 = vector.shape_cast %10 : vector<1x64x128xf32> to vector<64x128xf32>
    %cst_11 = arith.constant dense<0.000000e+00> : vector<32x128xf32>
    %12 = tpu.matmul %9, %11, %cst_11 {dimension_numbers = #tpu.dot_dimension_numbers<[1], [0], [0], [1], [0, 0, 1, 1], [], []>} : vector<32x64xf32>, vector<64x128xf32>, vector<32x128xf32> -> vector<32x128xf32>
    %13 = arith.addf %8, %12 : vector<32x128xf32>
    %14 = vector.extract_strided_slice %4 {offsets = [64, 0], sizes = [32, 64], strides = [1, 1]} : vector<96x64xf32> to vector<32x64xf32>
    %c2 = arith.constant 2 : index
    %c0_12 = arith.constant 0 : index
    %c0_13 = arith.constant 0 : index
    %15 = vector.load %arg4[%c2, %c0_12, %c0_13] : memref<3x64x128xf32, #tpu.memory_space<vmem>>, vector<1x64x128xf32>
    %16 = vector.shape_cast %15 : vector<1x64x128xf32> to vector<64x128xf32>
    %cst_14 = arith.constant dense<0.000000e+00> : vector<32x128xf32>
    %17 = tpu.matmul %14, %16, %cst_14 {dimension_numbers = #tpu.dot_dimension_numbers<[1], [0], [0], [1], [0, 0, 1, 1], [], []>} : vector<32x64xf32>, vector<64x128xf32>, vector<32x128xf32> -> vector<32x128xf32>
    %18 = arith.addf %13, %17 : vector<32x128xf32>
    %c0_15 = arith.constant 0 : index
    %c0_16 = arith.constant 0 : index
    %19 = vector.load %arg5[%c0_15, %c0_16] : memref<1x128xf32, #tpu.memory_space<vmem>>, vector<1x128xf32>
    %20 = vector.broadcast %19 : vector<1x128xf32> to vector<32x128xf32>
    %21 = arith.addf %18, %20 : vector<32x128xf32>
    %cst_17 = arith.constant 0.000000e+00 : f32
    %22 = vector.broadcast %cst_17 : f32 to vector<32x128xf32>
    %23 = arith.maximumf %21, %22 : vector<32x128xf32>
    %c0_18 = arith.constant 0 : index
    %c0_19 = arith.constant 0 : index
    %c0_20 = arith.constant 0 : index
    %24 = vector.load %arg6[%c0_18, %c0_19, %c0_20] : memref<1x32x128xf32, #tpu.memory_space<vmem>>, vector<1x32x128xf32>
    %25 = vector.shape_cast %24 : vector<1x32x128xf32> to vector<32x128xf32>
    %26 = vector.shape_cast %23 : vector<32x128xf32> to vector<1x32x128xf32>
    tpu.vector_store %arg6[%c0_18, %c0_19, %c0_20], %26 {strides = array<i32>} : memref<1x32x128xf32, #tpu.memory_space<vmem>>, vector<1x32x128xf32>,
    return
  }
  func.func @transform_0(%arg0: i32, %arg1: i32) -> (i32, i32, i32) {
    %c0_i32 = arith.constant 0 : i32
    %c0_i32_0 = arith.constant 0 : i32
    %c0_i32_1 = arith.constant 0 : i32
    return %arg0, %c0_i32, %c0_i32_0 : i32, i32, i32
  }
  func.func @transform_1(%arg0: i32, %arg1: i32) -> (i32, i32, i32) {
    %c0_i32 = arith.constant 0 : i32
    %c0_i32_0 = arith.constant 0 : i32
    %c0_i32_1 = arith.constant 0 : i32
    return %arg1, %c0_i32, %c0_i32_0 : i32, i32, i32
  }
  func.func @transform_2(%arg0: i32, %arg1: i32) -> (i32, i32, i32) {
    %c0_i32 = arith.constant 0 : i32
    %c0_i32_0 = arith.constant 0 : i32
    %c0_i32_1 = arith.constant 0 : i32
    %c0_i32_2 = arith.constant 0 : i32
    return %c0_i32, %c0_i32_0, %c0_i32_1 : i32, i32, i32
  }
  func.func @transform_3(%arg0: i32, %arg1: i32) -> (i32, i32) {
    %c0_i32 = arith.constant 0 : i32
    %c0_i32_0 = arith.constant 0 : i32
    %c0_i32_1 = arith.constant 0 : i32
    return %c0_i32, %c0_i32_0 : i32, i32
  }
  func.func @transform_4(%arg0: i32, %arg1: i32) -> (i32, i32, i32) {
    %c0_i32 = arith.constant 0 : i32
    %c0_i32_0 = arith.constant 0 : i32
    return %arg0, %arg1, %c0_i32 : i32, i32, i32
  }
}

</mosaic_0001>

<bundles_post_ra>
// kernel: tpu_custom_call.1
= control target key start
LH: loop header
LB: loop body
LE: loop exit
PB: predicated region body
PF: predicated region fallthrough
CT: control target
= control target key end

     0   :  { %9 = vsyncpa [#allocation3], 0  ;;  %s1549_s0 = inlined_call_operand.vmem [shape: f32[2,16,64], index: 0, kind: input, shape index: {}]   ;;  %s1550_s1 = inlined_call_operand.vmem [shape: f32[1,96,16], index: 1, kind: input, shape index: {}]   ;;  %s1551_s2 = inlined_call_operand.hbm [shape: f32[3,64,128], index: 2, kind: input, shape index: {}]   ;;  %s1552_s3 = inlined_call_operand.vmem [shape: f32[1,128], index: 3, kind: input, shape index: {}]   ;;  %s1553_s4 = inlined_call_operand.hbm [shape: f32[2,32,128], index: 4, kind: output, shape index: {}]  }
   0x1   :  { %10 = vsyncpa [#allocation4], 0 }
   0x2   :  { %12 = vsyncpa [#allocation4 + $0x1], 0  ;;  %s1333_s15 = smov 0   ;;  %s1335_s16 = smov 0  }
   0x3   :  { %s1337_s17 = smov 0   ;;  %s1339_s18 = smov 0  }
   0x4   :  { %s1341_s19 = smov 0   ;;  %s1343_s20 = smov 0  }
   0x5 LB: > { %s879_s21 = sadd.s32 4294967295, %s1300_s20   ;;  %s880_s22 = sadd.s32 4294967294, %s1300_s20   ;;  %s1300_s20 = sphi %s1343_s20, %s18_s20   ;;  %s1296_s19 = sphi %s1341_s19, %s1571_s19   ;;  %s1292_s18 = sphi %s1339_s18, %s1570_s18   ;;  %s1288_s17 = sphi %s1337_s17, %s1569_s17   ;;  %s1284_s16 = sphi %s1335_s16, %s1568_s16   ;;  %s1280_s15 = sphi %s1333_s15, %s1567_s15  }
   0x6   : > { %s30_s23 = sadd.s32 1, %s1296_s19  ;;  %s133_s24 = sadd.s32 1, %s1288_s17 }
   0x7   : > { %p32_p0 = scmp.ge.s32.totalorder %s30_s23, 2  ;;  %p143_p1 = scmp.ne.s32.totalorder %s1288_s17, %s1284_s16 }
   0x8   : > { %p144_p2 = scmp.eq.s32.totalorder %s879_s21, 1  ;;  %p149_p3 = scmp.ne.s32.totalorder %s1284_s16, %s1280_s15 }
   0x9   : > { %s1573_s23 = smov (%p32_p0, %s30_s23), 0  ;;  %p150_p5 = scmp.eq.s32.totalorder %s880_s22, 1 }
   0xa   : > { %p1373_p4 = por %p144_p2, %p143_p1  ;;  %s128_s26 = ssub.s32 %s1296_s19, %s1573_s23 }
   0xb   : > { %p881_p6 = scmp.ge.s32.totalorder %s1300_s20, 1  ;;  %p131_p7 = scmp.eq.s32.totalorder %s128_s26, 0 }
   0xc   : > { %s1558_s25 = scalar_select %p1373_p4, 1, 0 }
   0xd   : > { %p1380_p8 = por %p150_p5, %p149_p3  ;;  %p157_p9 = scmp.lt.s32.totalorder %s1300_s20, 3 }
   0xe   : > { %s1386_s28 = scalar_select %p131_p7, %s1288_s17, %s133_s24  }
   0xf   : > { %s1559_s27 = scalar_select %p1380_p8, 1, 0 }
  0x10   : > { %p1388_p10 = pnand %p881_p6, %p157_p9  ;;  %p1392_p11 = scmp.eq.s32.totalorder %s879_s21, 0 }
  0x11   : > { %s1302_s5 = smov [#allocation2]   ;;  %s1190_s10 = scalar_lea.hbm %s1551_s2, 3072 }
  0x12   : > { %s1560_s29 = scalar_select %p1388_p10, 1, 0 }
  0x13   : > { %s1561_s30 = scalar_select %p1392_p11, 1, 0 }
  0x14   : > { %p1126_p12 = pneg %p1388_p10  ;;  %s177_s6 = sshll.u32 %s1302_s5, 4  ;;  %s178_s6 = int_to_ptr.vmem [resolvable:$true] %s177_s6 }
  0x15   : > { %p1191_p0 = scmp.ne.s32.totalorder %s1551_s2, %s1190_s10  ;;  %p1197_p5 = scmp.lt.u32.totalorder %s1190_s10, %s1551_s2 }
  0x16   : > { %p1400_p13 = pnand %p1392_p11, %p1126_p12 }
  0x18   : > { %p1192_p1 = pneg %p1400_p13 }
  0x1a   : > { %p1193_p2 = pnand %p1192_p1, %p1191_p0 }
  0x1c   : > { %p1194_p3 = pneg %p1193_p2 }
  0x1e   : > { %p1199_p6 = pnand %p1197_p5, %p1194_p3 }
  0x20   : > { %1202 = shalt.err (!%p1199_p6)
}
  0x21   : > { %s1203_s21 = scalar_lea.vmem %s178_s6, 3072  ;;  %p1211_p8 = scmp.lt.s32.totalorder %s178_s6, %s178_s6 }
  0x22   : > { %p1204_p7 = scmp.ne.s32.totalorder %s178_s6, %s1203_s21  ;;  %p1212_p4 = scmp.lt.s32.totalorder %s1203_s21, %s1203_s21 }
  0x24   : > { %p1206_p9 = pnand %p1204_p7, %p1192_p1  ;;  %p1213_p11 = por %p1212_p4, %p1211_p8 }
  0x26   : > { %p1207_p12 = pneg %p1206_p9 }
  0x28   : > { %p1214_p10 = pnand %p1213_p11, %p1207_p12 }
  0x2a   : > { %1217 = shalt.err (!%p1214_p10)
}
  0x2b   : > { %s1303_s22 = smov 128   ;;  %s1304_s24 = smov 8  }
  0x2c   : > { %1129 = dma.hbm_to_vmem [thread:$0]  (!%p1400_p13), %s1551_s2, 3072, %s178_s6, [#allocation3], %s1303_s22, %s1303_s22, %s1304_s24  }
  0x2d   : > { %p1563_p0 = scmp.ne.s32.totalorder %s1560_s29, 0 }
  0x2e   : > { %p1564_p2 = scmp.ne.s32.totalorder (!%p1563_p0), %s1561_s30, 0 }
  0x2f   : > { %204 = sbr.rel (%p1563_p0) target bundleno = 536 (0x218), region = 36 }
  0x36   : > { %1271 = dma.done.wait (%p1564_p2), [#allocation3], 3072  }
  0x37   : > { %1273 = vsyncadd (%p1564_p2), [#allocation3], 4294964224  ;;  %p235_p4 = scmp.lt.s32.totalorder %s1292_s18, 1  ;;  %vm260_vm0 = vcmask 130048   ;;  %v248_v2 = vld [vmem:[%s1550_s1] sm:$0xff]  ;;  %v249_v4 = vld [vmem:[%s1550_s1 + $0x8] sm:$0xff] }
  0x38   : > { %976 = vmatprep.mubr.msk.f32.mxu0 %vm260_vm0, %v248_v2  ;;  %v250_v5 = vld [vmem:[%s1550_s1 + $0x10] sm:$0xff]  ;;  %v422_v6 = vld [vmem:[#allocation2] sm:$0xff]  ;;  %v423_v7 = vld [vmem:[#allocation2 + $0x8] sm:$0xff]  ;;  %vm439_vm1 = vcmask 523264   ;;  %s232_s24 = sand.u32 1, %s1284_s16   ;;  %s921_s7 = sshll.u32 %s1292_s18, 9 }
  0x39   : > { %s236_s8 = scalar_select %p235_p4, %s1292_s18, 1  ;;  %v424_v8 = vld [vmem:[#allocation2 + $0x10] sm:$0xff]  ;;  %v425_v9 = vld [vmem:[#allocation2 + $0x18] sm:$0xff]  ;;  %v1080_v10 = vpack.c.bf16 %v423_v7, %v422_v6  ;;  %v431_v12 = vld [vmem:[#allocation2 + $0x40] sm:$0xff] }
  0x3a   : > { %v1084_v11 = vpack.c.bf16 %v425_v9, %v424_v8  ;;  %v432_v13 = vld [vmem:[#allocation2 + $0x48] sm:$0xff]  ;;  %v426_v14 = vld [vmem:[#allocation2 + $0x20] sm:$0xff]  ;;  %v433_v17 = vld [vmem:[#allocation2 + $0x50] sm:$0xff]  ;;  %s1501_s6 = scalar_lea.hbm %s1553_s4, %s921_s7  ;;  %s1503_s30 = scalar_lea.sflag [#allocation4], %s232_s24 }
  0x3b   : > { %s920_s9 = sshll.u32 %s236_s8, 4  ;;  %v1064_v15 = vpack.c.bf16 %v432_v13, %v431_v12  ;;  %v427_v16 = vld [vmem:[#allocation2 + $0x28] sm:$0xff]  ;;  %v434_v18 = vld [vmem:[#allocation2 + $0x58] sm:$0xff]  ;;  %1081 = vmatprep.subr.bf16.mxu1 %v1080_v10  ;;  %v252_v21 = vld [vmem:[%s1550_s1 + $0x20] sm:$0xff]  ;;  %s887_s8 = sshll.u32 %s232_s24, 5 }
  0x3c   : > { %s239_s11 = scalar_lea.vmem %s1549_s0, %s920_s9  ;;  %v251_v19 = vld [vmem:[%s1550_s1 + $0x18] sm:$0xff]  ;;  %v1068_v20 = vpack.c.bf16 %v434_v18, %v433_v17  ;;  %1083 = vmatpush3.bf16.msra.mxu1 %v1080_v10  ;;  %v1088_v22 = vpack.c.bf16 %v427_v16, %v426_v14  ;;  %v428_v23 = vld [vmem:[#allocation2 + $0x30] sm:$0xff]  ;;  %v253_v25 = vld [vmem:[%s1550_s1 + $0x28] sm:$0xff]  ;;  %s234_s9 = scalar_lea.vmem [#allocation5], %s887_s8 }
  0x3d   : > { %v246_v0 = vld [vmem:[%s239_s11] sm:$0xff]  ;;  %v247_v1 = vld [vmem:[%s239_s11 + $0x8] sm:$0xff]  ;;  %1085 = vmatprep.subr.bf16.mxu1 %v1084_v11  ;;  %v429_v24 = vld [vmem:[#allocation2 + $0x38] sm:$0xff]  ;;  %s779_s10 = sshll.u32 %s234_s9, 4  ;;  %p1565_p10 = scmp.ne.s32.totalorder %s1558_s25, 0  ;;  %s1496_s10 = int_to_ptr.vmem [resolvable:$true] %s779_s10 }
  0x3e   : > { %v1060_v3 = vpack.c.bf16 %v247_v1, %v246_v0  ;;  %v254_v26 = vld [vmem:[%s1550_s1 + $0x30] sm:$0xff]  ;;  %v1092_v27 = vpack.c.bf16 %v429_v24, %v428_v23  ;;  %v255_v28 = vld [vmem:[%s1550_s1 + $0x38] sm:$0xff]  ;;  %v256_v29 = vld [vmem:[%s1550_s1 + $0x40] sm:$0xff]  ;;  %s1218_s18 = scalar_lea.vmem %s1496_s10, 512  ;;  %s1305_s12 = smov [#allocation5]  }
  0x3f   : > { %v257_v30 = vld [vmem:[%s1550_s1 + $0x48] sm:$0xff]  ;;  %v258_v31 = vld [vmem:[%s1550_s1 + $0x50] sm:$0xff]  ;;  %v259_v32 = vld [vmem:[%s1550_s1 + $0x58] sm:$0xff]  ;;  %p1219_p8 = scmp.ne.s32.totalorder %s1496_s10, %s1218_s18  ;;  %s1222_s13 = sshll.u32 %s1305_s12, 4  ;;  %s1223_s13 = int_to_ptr.vmem [resolvable:$false] %s1222_s13 }
  0x40   : > { %1061 = vmatprep.subr.bf16.mxu0 %v1060_v3  ;;  %1087 = vmatpush3.bf16.msra.mxu1 %v1084_v11  ;;  %v435_v33 = vld [vmem:[#allocation2 + $0x60] sm:$0xff]  ;;  %v436_v34 = vld [vmem:[#allocation2 + $0x68] sm:$0xff]  ;;  %v437_v39 = vld [vmem:[#allocation2 + $0x70] sm:$0xff]  ;;  %s1224_s14 = scalar_lea.vmem %s1223_s13, 1024  ;;  %p1225_p1 = scmp.lt.s32.totalorder %s1496_s10, %s1223_s13 }
  0x41   : > { %1063 = vmatpush3.bf16.msra.mxu0 %v1060_v3  ;;  %1089 = vmatprep.subr.bf16.mxu1 %v1088_v22  ;;  %v635_v35 = vld [vmem:[#allocation2 + $0x80] sm:$0xff]  ;;  %v1072_v36 = vpack.c.bf16 %v436_v34, %v435_v33  ;;  %v636_v37 = vld [vmem:[#allocation2 + $0x88] sm:$0xff]  ;;  %v438_v40 = vld [vmem:[#allocation2 + $0x78] sm:$0xff]  ;;  %p1220_p11 = pnand %p1219_p8, %p1565_p10  ;;  %p1226_p3 = scmp.lt.s32.totalorder %s1224_s14, %s1218_s18 }
  0x42   : > { %1065 = vmatprep.subr.bf16.mxu0 %v1064_v15  ;;  %v1096_v38 = vpack.c.bf16 %v636_v37, %v635_v35  ;;  %v1076_v41 = vpack.c.bf16 %v438_v40, %v437_v39  ;;  %v637_v42 = vld [vmem:[#allocation2 + $0x90] sm:$0xff]  ;;  %v638_v43 = vld [vmem:[#allocation2 + $0x98] sm:$0xff]  ;;  %v639_v47 = vld [vmem:[#allocation2 + $0xa0] sm:$0xff] }
  0x43   : > { %v1100_v46 = vpack.c.bf16 %v638_v43, %v637_v42  ;;  %v640_v48 = vld [vmem:[#allocation2 + $0xa8] sm:$0xff]  ;;  %v641_v52 = vld [vmem:[#allocation2 + $0xb0] sm:$0xff]  ;;  %v642_v53 = vld [vmem:[#allocation2 + $0xb8] sm:$0xff]  ;;  %p1221_p13 = pneg %p1220_p11  ;;  %p1227_p5 = por %p1226_p3, %p1225_p1 }
  0x44   : > { %977 = vmatmul.mubr.msk.f32.vlgmr.msra.gmra.mrb[0].mxu0 %vm260_vm0, %v249_v4  ;;  %1091 = vmatpush3.bf16.msra.mxu1 %v1088_v22  ;;  %v1104_v51 = vpack.c.bf16 %v640_v48, %v639_v47  ;;  %v1108_v56 = vpack.c.bf16 %v642_v53, %v641_v52  ;;  %v914_v4 = vld [vmem:[%s1552_s3] ss:$0 sm:$0xff] }
  0x45   : > { %979 = vmatprep.mubr.msk.f32.mxu0 %vm260_vm0, %v250_v5  ;;  %1067 = vmatpush3.bf16.msra.mxu0 %v1064_v15  ;;  %p1228_p6 = pnand %p1227_p5, %p1221_p13 }
  0x46   : > { %1069 = vmatprep.subr.bf16.mxu0 %v1068_v20  ;;  %1093 = vmatprep.subr.bf16.mxu1 %v1092_v27 }
  0x48   : > { %980 = vmatmul.mubr.msk.f32.gmra.mrb[2].mxu0 %vm260_vm0, %v251_v19  ;;  %1095 = vmatpush3.bf16.msra.mxu1 %v1092_v27 }
  0x49   : > { %982 = vmatprep.mubr.msk.f32.mxu0 %vm260_vm0, %v252_v21  ;;  %1071 = vmatpush3.bf16.msra.mxu0 %v1068_v20 }
  0x4a   : > { %1073 = vmatprep.subr.bf16.mxu0 %v1072_v36  ;;  %1097 = vmatprep.subr.bf16.mxu1 %v1096_v38 }
  0x4c   : > { %983 = vmatmul.mubr.msk.f32.gmra.mrb[4].mxu0 %vm260_vm0, %v253_v25 }
  0x4d   : > { %985 = vmatprep.mubr.msk.f32.mxu0 %vm260_vm0, %v254_v26  ;;  %1075 = vmatpush3.bf16.msra.mxu0 %v1072_v36 }
  0x4e   : > { %1077 = vmatprep.subr.bf16.mxu0 %v1076_v41 }
  0x50   : > { %986 = vmatmul.mubr.msk.f32.gmra.mrb[6].mxu0 %vm260_vm0, %v255_v28 }
  0x51   : > { %988 = vmatprep.mubr.msk.f32.mxu0 %vm260_vm0, %v256_v29  ;;  %1079 = vmatpush3.bf16.msra.mxu0 %v1076_v41 }
  0x54   : > { %989 = vmatmul.mubr.msk.f32.gmra.mrb[8].mxu0 %vm260_vm0, %v257_v30 }
  0x55   : > { %991 = vmatprep.mubr.msk.f32.mxu0 %vm260_vm0, %v258_v31 }
  0x58   : > { %992 = vmatmul.mubr.msk.f32.gmra.mrb[10].mxu0 %vm260_vm0, %v259_v32 }
 0x117   : > { %v978_v44 = vpop.f32.mrb[0].mxu0 }
 0x118   : > { %v363_v45 = vpop.f32.mrb[1].mxu0 }
 0x119   : > { %1032 = vmatprep.mubr.msk.f32.mxu1 %vm439_vm1, %v363_v45 }
 0x11a   : > { %1033 = vmatmul.mubr.msk.f32.vlgmr.msra.gmra.mrb[0].mxu1 %vm439_vm1, %v978_v44 }
 0x11b   : > { %v981_v49 = vpop.f32.mrb[2].mxu0  ;;  %1099 = vmatpush3.bf16.msra.mxu1 %v1096_v38 }
 0x11c   : > { %v373_v50 = vpop.f32.mrb[3].mxu0  ;;  %1101 = vmatprep.subr.bf16.mxu1 %v1100_v46 }
 0x11d   : > { %1035 = vmatprep.mubr.msk.f32.mxu1 %vm439_vm1, %v373_v50 }
 0x11e   : > { %1036 = vmatmul.mubr.msk.f32.gmra.mrb[2].mxu1 %vm439_vm1, %v981_v49 }
 0x11f   : > { %v984_v54 = vpop.f32.mrb[4].mxu0  ;;  %1103 = vmatpush3.bf16.msra.mxu1 %v1100_v46 }
 0x120   : > { %v383_v55 = vpop.f32.mrb[5].mxu0  ;;  %1105 = vmatprep.subr.bf16.mxu1 %v1104_v51 }
 0x121   : > { %1010 = vmatprep.mubr.msk.f32.mxu0 %vm439_vm1, %v383_v55 }
 0x122   : > { %1011 = vmatmul.mubr.msk.f32.vlgmr.msra.gmra.mrb[12].mxu0 %vm439_vm1, %v984_v54 }
 0x123   : > { %v987_v57 = vpop.f32.mrb[6].mxu0  ;;  %1107 = vmatpush3.bf16.msra.mxu1 %v1104_v51 }
 0x124   : > { %v393_v58 = vpop.f32.mrb[7].mxu0  ;;  %1109 = vmatprep.subr.bf16.mxu1 %v1108_v56 }
 0x125   : > { %1013 = vmatprep.mubr.msk.f32.mxu0 %vm439_vm1, %v393_v58 }
 0x126   : > { %1014 = vmatmul.mubr.msk.f32.gmra.mrb[14].mxu0 %vm439_vm1, %v987_v57 }
 0x127   : > { %v990_v59 = vpop.f32.mrb[8].mxu0  ;;  %1111 = vmatpush3.bf16.msra.mxu1 %v1108_v56 }
 0x128   : > { %v403_v60 = vpop.f32.mrb[9].mxu0 }
 0x129   : > { %1054 = vmatprep.mubr.msk.f32.mxu1 %vm439_vm1, %v403_v60 }
 0x12a   : > { %1055 = vmatmul.mubr.msk.f32.vlgmr.msra.gmra.mrb[0].mxu1 %vm439_vm1, %v990_v59 }
 0x12b   : > { %v993_v61 = vpop.f32.mrb[10].mxu0 }
 0x12c   : > { %v413_v62 = vpop.f32.mrb[11].mxu0 }
 0x12d   : > { %1057 = vmatprep.mubr.msk.f32.mxu1 %vm439_vm1, %v413_v62 }
 0x12e   : > { %1058 = vmatmul.mubr.msk.f32.gmra.mrb[2].mxu1 %vm439_vm1, %v993_v61 }
 0x1f5   : > { %v1012_v63 = vpop.f32.mrb[12].mxu0 }
 0x1f6   : > { %v518_v0 = vpop.f32.mrb[13].mxu0 }
 0x1f9   : > { %v1015_v1 = vpop.f32.mrb[14].mxu0 }
 0x1fa   : > { %v528_v2 = vpop.f32.mrb[15].mxu0 }
 0x1fd   : > { %v1056_v3 = vpop.f32.mrb[0].mxu1 }
 0x1fe   : > { %v1112_v5 = vadd.f32 %v1056_v3, %v1012_v63  ;;  %v721_v6 = vpop.f32.mrb[1].mxu1 }
 0x1ff   : > { %v1113_v7 = vadd.f32 %v721_v6, %v518_v0 }
 0x200   : > { %v752_v8 = vadd.f32 %v1112_v5, %v914_v4 }
 0x201   : > { %v751_v9 = vadd.f32 %v1113_v7, %v914_v4  ;;  %v1059_v10 = vpop.f32.mrb[2].mxu1 }
 0x202   : > { %v756_v11 = vmax.f32 %v752_v8, 0.0  ;;  %v1114_v12 = vadd.f32 %v1059_v10, %v1015_v1  ;;  %v731_v13 = vpop.f32.mrb[3].mxu1 }
 0x203   : > { %v755_v14 = vmax.f32 %v751_v9, 0.0  ;;  %v1115_v15 = vadd.f32 %v731_v13, %v528_v2 }
 0x204   : > { %760 = vst [vmem:[%s234_s9 + $0x8] sm:$0xff] %v756_v11  ;;  %v754_v16 = vadd.f32 %v1114_v12, %v914_v4 }
 0x205   : > { %759 = vst [vmem:[%s234_s9] sm:$0xff] %v755_v14  ;;  %v753_v17 = vadd.f32 %v1115_v15, %v914_v4 }
 0x206   : > { %v758_v18 = vmax.f32 %v754_v16, 0.0 }
 0x207   : > { %v757_v19 = vmax.f32 %v753_v17, 0.0 }
 0x208   : > { %762 = vst [vmem:[%s234_s9 + $0x18] sm:$0xff] %v758_v18 }
 0x209   : > { %761 = vst [vmem:[%s234_s9 + $0x10] sm:$0xff] %v757_v19 }
 0x20a   : > { %1231 = shalt.err (!%p1228_p6)
}
 0x20b   : > { %s1232_s21 = scalar_lea.hbm %s1501_s6, 512  ;;  %s1236_s26 = scalar_lea.hbm %s1553_s4, 1024 }
 0x20c   : > { %p1233_p7 = scmp.ne.s32.totalorder %s1501_s6, %s1232_s21  ;;  %p1237_p0 = scmp.lt.u32.totalorder %s1501_s6, %s1553_s4 }
 0x20d   : > { %p1238_p2 = scmp.lt.u32.totalorder %s1236_s26, %s1232_s21  ;;  %p1240_p8 = scmp.lt.u32.totalorder %s1232_s21, %s1501_s6 }
 0x20e   : > { %p1234_p9 = pnand %p1233_p7, %p1565_p10 }
 0x20f   : > { %p1239_p4 = por %p1238_p2, %p1237_p0 }
 0x210   : > { %p1235_p12 = pneg %p1234_p9 }
 0x211   : > { %p1241_p11 = por %p1240_p8, %p1239_p4 }
 0x213   : > { %p1242_p13 = pnand %p1241_p11, %p1235_p12 }
 0x215   : > { %1245 = shalt.err (!%p1242_p13)
}
 0x216   : > { %s1306_s9 = smov 128   ;;  %s1307_s7 = smov 8  }
 0x217   : > { %1124 = dma.vmem_to_hbm [thread:$0]  (%p1565_p10), %s1496_s10, 512, %s1501_s6, %s1503_s30, %s1306_s9, %s1306_s9, %s1307_s7  }
 0x218 PF: > { %p1136_p1 = scmp.ge.s32.totalorder %s1300_s20, 2  ;;  %s794_s11 = sand.u32 1, %s1280_s15  }
 0x219   : > { %p1566_p3 = scmp.ne.s32.totalorder %s1559_s27, 0  ;;  %s795_s29 = scalar_lea.sflag [#allocation4], %s794_s11 }
 0x21b   : > { %p1131_p5 = pnand %p1136_p1, %p1566_p3 }
 0x21d   : > { %1275 = dma.done.wait (!%p1131_p5), %s795_s29, 512  }
 0x21e   : > { %1277 = vsyncadd (!%p1131_p5), %s795_s29, 4294966784  ;;  %s18_s20 = sadd.s32 1, %s1300_s20   ;;  %s1567_s15 = smov %s1284_s16 }
 0x21f   : > { %p15_p6 = scmp.ge.s32.totalorder %s18_s20, 4   ;;  %s1568_s16 = smov %s1288_s17 }
 0x220   : > { %s1569_s17 = smov %s1386_s28  ;;  %s1570_s18 = smov %s1296_s19 }
 0x221   : > { %s1571_s19 = smov %s1573_s23  ;;  %17 = sbr.rel (!%p15_p6) target bundleno = 5 (0x5), region = 81 }
 0x228   :  { %800 = vsyncpa [#allocation3], 1 }
 0x229   :  { %802 = vsyncpa [#allocation3 + $0x1], 1 }
 0x22a   :  { %803 = vsyncpa [#allocation4], 1 }
 0x22b   :  { %805 = vsyncpa [#allocation4 + $0x1], 1 }

</bundles_post_ra>
